<compile_context>
chip_gen: v7x
topology: tpu7x:2x2x1
jax: 0.10.0
libtpu: 0.0.40
codegen_flags: <defaults>
</compile_context>

<pallas_src>
import copy
import functools
import numpy as np

import jax
import jax.numpy as jnp
from jax.experimental import pallas as pl
from jax.experimental.pallas import tpu as pltpu

LANES = 128
CH_CHUNK = 128            # channel-vocab K-chunk fed to the MXU per step


def _round_up(x, m):
    return ((x + m - 1) // m) * m


# ----------------------------------------------------------------------------
# Host-side module setup (mirrors LLMShapeEncoder.__init__)
# ----------------------------------------------------------------------------
class LLMShapeEncoderHost:
    def __init__(self, hid, num_classes, max_shape, key):
        assert max_shape[2] == max_shape[3], max_shape
        assert hid % 4 == 0, hid
        self.hid = hid
        self.num_classes = num_classes
        self.ch_steps = (2 ** 3, 2 ** 6, 2 ** 12, 2 ** 13)
        self.channels = np.unique(
            [1, 3, num_classes, 32000, 50257, 128256]
            + list(range(self.ch_steps[0], self.ch_steps[1], 2 ** 3))
            + list(range(self.ch_steps[1], self.ch_steps[2], 2 ** 4))
            + list(range(self.ch_steps[2], self.ch_steps[3] + 1, 2 ** 5)))
        self.spatial = np.unique(
            list(range(1, max(12, max_shape[3]), 2)) + [14, 16])

        self.channels_lookup = {int(c): i for i, c in enumerate(self.channels)}
        self.channels_lookup_training = copy.deepcopy(self.channels_lookup)
        for c in range(4, self.ch_steps[0]):
            self.channels_lookup[c] = self.channels_lookup[self.ch_steps[0]]
        # nearest-channel fill (vectorized equivalent of the original argmin loop)
        all_c = np.arange(1, int(self.channels[-1]))
        pos = np.searchsorted(self.channels, all_c)
        pos = np.clip(pos, 1, len(self.channels) - 1)
        left, right = self.channels[pos - 1], self.channels[pos]
        nearest_idx = np.where(all_c - left <= right - all_c, pos - 1, pos)
        for c, ni in zip(all_c.tolist(), nearest_idx.tolist()):
            if c not in self.channels_lookup:
                self.channels_lookup[c] = int(ni)

        self.spatial_lookup = {int(c): i for i, c in enumerate(self.spatial)}
        self.spatial_lookup_training = copy.deepcopy(self.spatial_lookup)
        self.spatial_lookup[2] = self.spatial_lookup[3]
        for c in range(1, int(self.spatial[-1])):
            if c not in self.spatial_lookup:
                self.spatial_lookup[c] = self.spatial_lookup[
                    int(self.spatial[np.argmin(abs(self.spatial - c))])]

        n_ch, n_s = len(self.channels), len(self.spatial)
        self.n_ch, self.n_s = n_ch, n_s
        h4 = hid // 4
        k1, k2 = jax.random.split(key)
        # torch.nn.Embedding default init: N(0, 1)
        self.embed_spatial = jax.random.normal(k1, (n_s + 1, h4), dtype=jnp.float32)
        self.embed_channel = jax.random.normal(k2, (n_ch + 1, h4), dtype=jnp.float32)

        # per-column vocab offsets, baked into shape_ind on the host:
        #   col 0 -> E_ch copy 0, col 1 -> E_ch copy 1,
        #   col 2 -> E_sp copy 0, col 3 -> E_sp copy 1
        self.col_offsets_np = np.array([0, n_ch + 1, 0, n_s + 1], dtype=np.int32)
        self.dummy_ind = (np.array([[n_ch, n_ch, n_s, n_s]], dtype=np.int32)
                          + self.col_offsets_np[None, :])

        # -------- split fused-gather tables (host-built, bf16, vocab-padded) --
        # channel table rows: [E_ch copy0 | E_ch copy1]; copy k only occupies
        # lane slice [k*h4:(k+1)*h4].  spatial table rows occupy lane slices
        # [2*h4:3*h4] and [3*h4:hid].  A one-hot matmul per table, summed,
        # equals the concat of the 4 embedding gathers.
        ec = np.asarray(self.embed_channel)
        es = np.asarray(self.embed_spatial)
        v_ch = 2 * (n_ch + 1)
        v_sp = 2 * (n_s + 1)
        v_ch_pad = _round_up(v_ch, CH_CHUNK)
        v_sp_pad = _round_up(v_sp, LANES)
        ch_tbl = np.zeros((v_ch_pad, hid), dtype=np.float32)
        ch_tbl[0:n_ch + 1, 0 * h4:1 * h4] = ec
        ch_tbl[n_ch + 1:v_ch, 1 * h4:2 * h4] = ec
        sp_tbl = np.zeros((v_sp_pad, hid), dtype=np.float32)
        sp_tbl[0:n_s + 1, 2 * h4:3 * h4] = es
        sp_tbl[n_s + 1:v_sp, 3 * h4:4 * h4] = es
        # bf16 tables: one-hot values (0/1) are exact; embedding values round
        # to bf16 (the self-check below compares against bf16-rounded tables).
        self.channel_table = jnp.asarray(ch_tbl, dtype=jnp.bfloat16)
        self.spatial_table = jnp.asarray(sp_tbl, dtype=jnp.bfloat16)

    @staticmethod
    def tensor_shape_to_4d(sz):
        if len(sz) == 1:
            sz = (sz[0], 1)
        if len(sz) == 2:
            sz = (sz[0], sz[1], 1, 1)
        if len(sz) == 3:
            if sz[0] == 1 and min(sz[1:]) > 1:
                s = int(np.floor(sz[1] ** 0.5))
                sz = (1, sz[2], s, s)
            else:
                sz = (sz[0], sz[1], sz[2], 1)
        return sz

    def build_shape_ind(self, n_rows, params_map, predict_class_layers=True):
        # Pure-Python dict lookups; no Pallas equivalent, kept on host.
        # Per-column vocab offsets are already baked in so the device sees
        # table-ready indices (no per-call offset add on device).
        shape_ind = np.tile(self.dummy_ind, (n_rows, 1)).astype(np.int32)
        off = self.col_offsets_np
        for node_ind in params_map:
            sz = params_map[node_ind][0]['sz']
            if sz is None:
                continue
            sz = self.tensor_shape_to_4d(sz)
            assert len(sz) == 4, sz
            if not predict_class_layers and params_map[node_ind][1] in ['cls_w', 'cls_b']:
                sz = (self.num_classes, *sz[1:])
            for i in range(4):
                if i < 2:
                    key = sz[i] if sz[i] in self.channels_lookup else int(self.channels[-1])
                    shape_ind[node_ind, i] = self.channels_lookup[key] + off[i]
                else:
                    key = sz[i] if sz[i] in self.spatial_lookup else int(self.spatial[-1])
                    shape_ind[node_ind, i] = self.spatial_lookup[key] + off[i]
        return shape_ind


# ----------------------------------------------------------------------------
# Pallas kernel: split channel/spatial one-hot matmul gather + add
# ----------------------------------------------------------------------------
def _shape_encoder_kernel(ind_ref, x_ref, ch_ref, sp_ref, o_ref):
    tn = x_ref.shape[0]
    v_sp = sp_ref.shape[0]
    v_ch = ch_ref.shape[0]
    ind = ind_ref[...]                                   # (TN, 4) int32, offsets baked in

    # accumulate in f32; cast to the output dtype once at the end (bf16-x safe)
    acc = x_ref[...].astype(jnp.float32)                 # (TN, H)

    # ---- spatial gather: tiny vocab (padded to 128) -> one one-hot + one dot
    iota_s = jax.lax.broadcasted_iota(jnp.int32, (tn, v_sp), 1)
    oh_s = ((iota_s == ind[:, 2:3]) | (iota_s == ind[:, 3:4])).astype(sp_ref.dtype)
    acc = acc + jnp.dot(oh_s, sp_ref[...], preferred_element_type=jnp.float32)

    # ---- channel gather: large vocab, K-chunked so the (TN, V_ch) one-hot is
    # never materialized; each 128-lane slab feeds the MXU immediately.
    ind_c0 = ind[:, 0:1]
    ind_c1 = ind[:, 1:2]
    base = jax.lax.broadcasted_iota(jnp.int32, (tn, CH_CHUNK), 1)
    for c in range(v_ch // CH_CHUNK):
        iota_c = base + c * CH_CHUNK
        oh_c = ((iota_c == ind_c0) | (iota_c == ind_c1)).astype(ch_ref.dtype)
        acc = acc + jnp.dot(oh_c, ch_ref[c * CH_CHUNK:(c + 1) * CH_CHUNK, :],
                            preferred_element_type=jnp.float32)

    o_ref[...] = acc.astype(o_ref.dtype)


# ----------------------------------------------------------------------------
# Wrapper: ragged row grid, no pads/slices, per-generation VMEM budget
# ----------------------------------------------------------------------------
@functools.lru_cache(maxsize=1)
def _vmem_capacity_bytes():
    try:
        return int(pltpu.get_tpu_info().vmem_capacity_bytes)
    except Exception:
        return 64 * 1024 * 1024          # conservative fallback (v7x per-TC size)


def _sublane_multiple(dtype):
    return {4: 8, 2: 16, 1: 32}.get(np.dtype(dtype).itemsize, 8)


def _vmem_estimate_bytes(tn, hid, v_ch, v_sp, x_bytes):
    return (2 * 2 * tn * hid * x_bytes      # x + out tiles, double-buffered
            + 2 * tn * LANES * 4            # ind tile (lanes pad to 128), 2 bufs
            + (v_ch + v_sp) * hid * 2       # bf16 tables, single-buffered
            + 4 * tn * LANES * 2            # one-hot slab temporaries (bf16)
            + 2 * tn * hid * 4)             # f32 accumulator + headroom


def _choose_row_tile(n, hid, v_ch, v_sp, x_bytes, budget_bytes, sub):
    tn = min(_round_up(max(n, 1), sub), 2048)
    while tn > sub and _vmem_estimate_bytes(tn, hid, v_ch, v_sp, x_bytes) > budget_bytes:
        tn = max(sub, (tn // 2) // sub * sub)
    return tn


def _const_table_spec(shape):
    """Whole-table BlockSpec; single-buffered when the jax version supports it."""
    idx = lambda i: (0, 0)
    try:
        return pl.BlockSpec(shape, idx, pipeline_mode=pl.Buffered(1))
    except Exception:
        return pl.BlockSpec(shape, idx)


@jax.jit
def llm_shape_encoder_forward(x, shape_ind, channel_table, spatial_table):
    """out = x + gather-embed(shape_ind); tables are bf16 (V_pad, hid)."""
    n, hid = x.shape
    v_ch, h_c = channel_table.shape
    v_sp, h_s = spatial_table.shape
    assert h_c == hid and h_s == hid, (h_c, h_s, hid)
    assert v_ch % CH_CHUNK == 0, v_ch

    sub = _sublane_multiple(x.dtype)
    x_bytes = np.dtype(x.dtype).itemsize
    cap = _vmem_capacity_bytes()
    # v5e/v6e (128 MiB): 32 MiB budget; v7x (64 MiB per TC, table per core): 16 MiB
    budget = min(max(cap // 4, 8 * 1024 * 1024), 32 * 1024 * 1024)
    tn = _choose_row_tile(n, hid, v_ch, v_sp, x_bytes, budget, sub)

    est = _vmem_estimate_bytes(tn, hid, v_ch, v_sp, x_bytes)
    vmem_limit = int(min(max(2 * est, 16 * 1024 * 1024),
                         min(56 * 1024 * 1024, cap - cap // 8)))

    grid = (pl.cdiv(n, tn),)    # ragged last row tile is masked by Pallas; no pads

    return pl.pallas_call(
        _shape_encoder_kernel,
        out_shape=jax.ShapeDtypeStruct((n, hid), x.dtype),
        grid_spec=pltpu.PrefetchScalarGridSpec(
            num_scalar_prefetch=0,
            grid=grid,
            in_specs=[
                pl.BlockSpec((tn, 4), lambda i: (i, 0)),      # table-ready indices
                pl.BlockSpec((tn, hid), lambda i: (i, 0)),    # x row tile (full hid)
                _const_table_spec((v_ch, hid)),               # channel table (bf16)
                _const_table_spec((v_sp, hid)),               # spatial table (bf16)
            ],
            out_specs=pl.BlockSpec((tn, hid), lambda i: (i, 0)),
        ),
        compiler_params=pltpu.CompilerParams(
            dimension_semantics=("parallel",),   # v7x: 2 TCs split the row tiles
            vmem_limit_bytes=vmem_limit,
        ),
    )(shape_ind, x, channel_table, spatial_table)


# ----------------------------------------------------------------------------
# Demo / self-check
# ----------------------------------------------------------------------------
if __name__ == "__main__":
    hid = 32
    num_classes = 10
    max_shape = (64, 64, 16, 16)
    N = 8

    key = jax.random.PRNGKey(0)
    k_mod, k_x = jax.random.split(key)

    enc = LLMShapeEncoderHost(hid, num_classes, max_shape, k_mod)

    # synthetic params_map: node_ind -> ({'sz': shape}, tag)
    params_map = {
        0: ({'sz': (64, 3, 3, 3)}, 'conv.weight'),
        1: ({'sz': (64,)}, 'bn.bias'),
        2: ({'sz': (128, 64)}, 'fc.weight'),
        3: ({'sz': (1, 49, 384)}, 'pos_embed'),
        5: ({'sz': (num_classes, 128)}, 'cls_w'),
        6: ({'sz': None}, 'skip'),
    }

    x = jax.random.normal(k_x, (N, hid), dtype=jnp.float32)
    shape_ind_np = enc.build_shape_ind(N, params_map, predict_class_layers=True)
    shape_ind = jnp.asarray(shape_ind_np, dtype=jnp.int32)

    out = llm_shape_encoder_forward(x, shape_ind, enc.channel_table, enc.spatial_table)
    out = jax.block_until_ready(out)
    assert out.shape == (N, hid), out.shape

    # reference: plain numpy gather + concat + add (as in the PyTorch module),
    # using bf16-rounded embedding tables since the kernel stores them in bf16
    # (the one-hot matmul itself is exact: 1.0 * bf16 value accumulated in f32).
    raw_ind = shape_ind_np - enc.col_offsets_np[None, :]
    ec_bf = np.asarray(enc.embed_channel.astype(jnp.bfloat16).astype(jnp.float32))
    es_bf = np.asarray(enc.embed_spatial.astype(jnp.bfloat16).astype(jnp.float32))
    ref_embed = np.concatenate(
        [ec_bf[raw_ind[:, 0]], ec_bf[raw_ind[:, 1]],
         es_bf[raw_ind[:, 2]], es_bf[raw_ind[:, 3]]], axis=1)
    ref = np.asarray(x) + ref_embed
    np.testing.assert_allclose(np.asarray(out), ref, rtol=1e-5, atol=1e-5)

    print("KERNEL_OK")
</pallas_src>

<mosaic_0001>
module attributes {stable_mosaic.version = 11 : i64} {
  func.func @_shape_encoder_kernel(%arg0: i32, %arg1: memref<8x4xi32, #tpu.memory_space<vmem>>, %arg2: memref<8x32xf32, #tpu.memory_space<vmem>>, %arg3: memref<896x32xbf16, #tpu.memory_space<vmem>>, %arg4: memref<128x32xbf16, #tpu.memory_space<vmem>>, %arg5: memref<8x32xf32, #tpu.memory_space<vmem>>) attributes {dimension_semantics = [#tpu.dimension_semantics<parallel>], iteration_bounds = array<i64: 1>, scalar_prefetch = 0 : i64, scratch_operands = 0 : i64, tpu.core_type = #tpu.core_type<tc>, window_params = [{transform_indices = @transform_0, window_bounds = array<i64: 8, 4>}, {transform_indices = @transform_1, window_bounds = array<i64: 8, 32>}, {pipeline_mode = #tpu.pipeline_mode<synchronous>, transform_indices = @transform_2, window_bounds = array<i64: 896, 32>}, {pipeline_mode = #tpu.pipeline_mode<synchronous>, transform_indices = @transform_3, window_bounds = array<i64: 128, 32>}, {transform_indices = @transform_4, window_bounds = array<i64: 8, 32>}]} {
    %c0 = arith.constant 0 : index
    %c0_0 = arith.constant 0 : index
    %0 = vector.load %arg1[%c0, %c0_0] : memref<8x4xi32, #tpu.memory_space<vmem>>, vector<8x4xi32>
    %c0_1 = arith.constant 0 : index
    %c0_2 = arith.constant 0 : index
    %1 = vector.load %arg2[%c0_1, %c0_2] : memref<8x32xf32, #tpu.memory_space<vmem>>, vector<8x32xf32>
    %2 = tpu.iota {dimensions = array<i32: 1>} : vector<8x128xi32>
    %3 = vector.extract_strided_slice %0 {offsets = [0, 2], sizes = [8, 1], strides = [1, 1]} : vector<8x4xi32> to vector<8x1xi32>
    %4 = vector.broadcast %3 : vector<8x1xi32> to vector<8x128xi32>
    %5 = arith.cmpi eq, %2, %4 : vector<8x128xi32>
    %6 = vector.extract_strided_slice %0 {offsets = [0, 3], sizes = [8, 1], strides = [1, 1]} : vector<8x4xi32> to vector<8x1xi32>
    %7 = vector.broadcast %6 : vector<8x1xi32> to vector<8x128xi32>
    %8 = arith.cmpi eq, %2, %7 : vector<8x128xi32>
    %9 = arith.ori %5, %8 : vector<8x128xi1>
    %10 = arith.extui %9 : vector<8x128xi1> to vector<8x128xi32>
    %11 = arith.sitofp %10 : vector<8x128xi32> to vector<8x128xf32>
    %12 = arith.truncf %11 : vector<8x128xf32> to vector<8x128xbf16>
    %c0_3 = arith.constant 0 : index
    %c0_4 = arith.constant 0 : index
    %13 = vector.load %arg4[%c0_3, %c0_4] : memref<128x32xbf16, #tpu.memory_space<vmem>>, vector<128x32xbf16>
    %cst = arith.constant dense<0.000000e+00> : vector<8x32xf32>
    %14 = tpu.matmul %12, %13, %cst {dimension_numbers = #tpu.dot_dimension_numbers<[1], [0], [0], [1], [0, 0, 1, 1], [], []>} : vector<8x128xbf16>, vector<128x32xbf16>, vector<8x32xf32> -> vector<8x32xf32>
    %15 = arith.addf %1, %14 : vector<8x32xf32>
    %16 = vector.extract_strided_slice %0 {offsets = [0, 0], sizes = [8, 1], strides = [1, 1]} : vector<8x4xi32> to vector<8x1xi32>
    %17 = vector.extract_strided_slice %0 {offsets = [0, 1], sizes = [8, 1], strides = [1, 1]} : vector<8x4xi32> to vector<8x1xi32>
    %18 = tpu.iota {dimensions = array<i32: 1>} : vector<8x128xi32>
    %c0_i32 = arith.constant 0 : i32
    %19 = vector.broadcast %c0_i32 : i32 to vector<8x128xi32>
    %20 = arith.addi %18, %19 : vector<8x128xi32>
    %21 = vector.broadcast %16 : vector<8x1xi32> to vector<8x128xi32>
    %22 = arith.cmpi eq, %20, %21 : vector<8x128xi32>
    %23 = vector.broadcast %17 : vector<8x1xi32> to vector<8x128xi32>
    %24 = arith.cmpi eq, %20, %23 : vector<8x128xi32>
    %25 = arith.ori %22, %24 : vector<8x128xi1>
    %26 = arith.extui %25 : vector<8x128xi1> to vector<8x128xi32>
    %27 = arith.sitofp %26 : vector<8x128xi32> to vector<8x128xf32>
    %28 = arith.truncf %27 : vector<8x128xf32> to vector<8x128xbf16>
    %c0_5 = arith.constant 0 : index
    %c0_6 = arith.constant 0 : index
    %29 = vector.load %arg3[%c0_5, %c0_6] : memref<896x32xbf16, #tpu.memory_space<vmem>>, vector<128x32xbf16>
    %cst_7 = arith.constant dense<0.000000e+00> : vector<8x32xf32>
    %30 = tpu.matmul %28, %29, %cst_7 {dimension_numbers = #tpu.dot_dimension_numbers<[1], [0], [0], [1], [0, 0, 1, 1], [], []>} : vector<8x128xbf16>, vector<128x32xbf16>, vector<8x32xf32> -> vector<8x32xf32>
    %31 = arith.addf %15, %30 : vector<8x32xf32>
    %c128_i32 = arith.constant 128 : i32
    %32 = vector.broadcast %c128_i32 : i32 to vector<8x128xi32>
    %33 = arith.addi %18, %32 : vector<8x128xi32>
    %34 = vector.broadcast %16 : vector<8x1xi32> to vector<8x128xi32>
    %35 = arith.cmpi eq, %33, %34 : vector<8x128xi32>
    %36 = vector.broadcast %17 : vector<8x1xi32> to vector<8x128xi32>
    %37 = arith.cmpi eq, %33, %36 : vector<8x128xi32>
    %38 = arith.ori %35, %37 : vector<8x128xi1>
    %39 = arith.extui %38 : vector<8x128xi1> to vector<8x128xi32>
    %40 = arith.sitofp %39 : vector<8x128xi32> to vector<8x128xf32>
    %41 = arith.truncf %40 : vector<8x128xf32> to vector<8x128xbf16>
    %c128 = arith.constant 128 : index
    %c0_8 = arith.constant 0 : index
    %42 = vector.load %arg3[%c128, %c0_8] : memref<896x32xbf16, #tpu.memory_space<vmem>>, vector<128x32xbf16>
    %cst_9 = arith.constant dense<0.000000e+00> : vector<8x32xf32>
    %43 = tpu.matmul %41, %42, %cst_9 {dimension_numbers = #tpu.dot_dimension_numbers<[1], [0], [0], [1], [0, 0, 1, 1], [], []>} : vector<8x128xbf16>, vector<128x32xbf16>, vector<8x32xf32> -> vector<8x32xf32>
    %44 = arith.addf %31, %43 : vector<8x32xf32>
    %c256_i32 = arith.constant 256 : i32
    %45 = vector.broadcast %c256_i32 : i32 to vector<8x128xi32>
    %46 = arith.addi %18, %45 : vector<8x128xi32>
    %47 = vector.broadcast %16 : vector<8x1xi32> to vector<8x128xi32>
    %48 = arith.cmpi eq, %46, %47 : vector<8x128xi32>
    %49 = vector.broadcast %17 : vector<8x1xi32> to vector<8x128xi32>
    %50 = arith.cmpi eq, %46, %49 : vector<8x128xi32>
    %51 = arith.ori %48, %50 : vector<8x128xi1>
    %52 = arith.extui %51 : vector<8x128xi1> to vector<8x128xi32>
    %53 = arith.sitofp %52 : vector<8x128xi32> to vector<8x128xf32>
    %54 = arith.truncf %53 : vector<8x128xf32> to vector<8x128xbf16>
    %c256 = arith.constant 256 : index
    %c0_10 = arith.constant 0 : index
    %55 = vector.load %arg3[%c256, %c0_10] : memref<896x32xbf16, #tpu.memory_space<vmem>>, vector<128x32xbf16>
    %cst_11 = arith.constant dense<0.000000e+00> : vector<8x32xf32>
    %56 = tpu.matmul %54, %55, %cst_11 {dimension_numbers = #tpu.dot_dimension_numbers<[1], [0], [0], [1], [0, 0, 1, 1], [], []>} : vector<8x128xbf16>, vector<128x32xbf16>, vector<8x32xf32> -> vector<8x32xf32>
    %57 = arith.addf %44, %56 : vector<8x32xf32>
    %c384_i32 = arith.constant 384 : i32
    %58 = vector.broadcast %c384_i32 : i32 to vector<8x128xi32>
    %59 = arith.addi %18, %58 : vector<8x128xi32>
    %60 = vector.broadcast %16 : vector<8x1xi32> to vector<8x128xi32>
    %61 = arith.cmpi eq, %59, %60 : vector<8x128xi32>
    %62 = vector.broadcast %17 : vector<8x1xi32> to vector<8x128xi32>
    %63 = arith.cmpi eq, %59, %62 : vector<8x128xi32>
    %64 = arith.ori %61, %63 : vector<8x128xi1>
    %65 = arith.extui %64 : vector<8x128xi1> to vector<8x128xi32>
    %66 = arith.sitofp %65 : vector<8x128xi32> to vector<8x128xf32>
    %67 = arith.truncf %66 : vector<8x128xf32> to vector<8x128xbf16>
    %c384 = arith.constant 384 : index
    %c0_12 = arith.constant 0 : index
    %68 = vector.load %arg3[%c384, %c0_12] : memref<896x32xbf16, #tpu.memory_space<vmem>>, vector<128x32xbf16>
    %cst_13 = arith.constant dense<0.000000e+00> : vector<8x32xf32>
    %69 = tpu.matmul %67, %68, %cst_13 {dimension_numbers = #tpu.dot_dimension_numbers<[1], [0], [0], [1], [0, 0, 1, 1], [], []>} : vector<8x128xbf16>, vector<128x32xbf16>, vector<8x32xf32> -> vector<8x32xf32>
    %70 = arith.addf %57, %69 : vector<8x32xf32>
    %c512_i32 = arith.constant 512 : i32
    %71 = vector.broadcast %c512_i32 : i32 to vector<8x128xi32>
    %72 = arith.addi %18, %71 : vector<8x128xi32>
    %73 = vector.broadcast %16 : vector<8x1xi32> to vector<8x128xi32>
    %74 = arith.cmpi eq, %72, %73 : vector<8x128xi32>
    %75 = vector.broadcast %17 : vector<8x1xi32> to vector<8x128xi32>
    %76 = arith.cmpi eq, %72, %75 : vector<8x128xi32>
    %77 = arith.ori %74, %76 : vector<8x128xi1>
    %78 = arith.extui %77 : vector<8x128xi1> to vector<8x128xi32>
    %79 = arith.sitofp %78 : vector<8x128xi32> to vector<8x128xf32>
    %80 = arith.truncf %79 : vector<8x128xf32> to vector<8x128xbf16>
    %c512 = arith.constant 512 : index
    %c0_14 = arith.constant 0 : index
    %81 = vector.load %arg3[%c512, %c0_14] : memref<896x32xbf16, #tpu.memory_space<vmem>>, vector<128x32xbf16>
    %cst_15 = arith.constant dense<0.000000e+00> : vector<8x32xf32>
    %82 = tpu.matmul %80, %81, %cst_15 {dimension_numbers = #tpu.dot_dimension_numbers<[1], [0], [0], [1], [0, 0, 1, 1], [], []>} : vector<8x128xbf16>, vector<128x32xbf16>, vector<8x32xf32> -> vector<8x32xf32>
    %83 = arith.addf %70, %82 : vector<8x32xf32>
    %c640_i32 = arith.constant 640 : i32
    %84 = vector.broadcast %c640_i32 : i32 to vector<8x128xi32>
    %85 = arith.addi %18, %84 : vector<8x128xi32>
    %86 = vector.broadcast %16 : vector<8x1xi32> to vector<8x128xi32>
    %87 = arith.cmpi eq, %85, %86 : vector<8x128xi32>
    %88 = vector.broadcast %17 : vector<8x1xi32> to vector<8x128xi32>
    %89 = arith.cmpi eq, %85, %88 : vector<8x128xi32>
    %90 = arith.ori %87, %89 : vector<8x128xi1>
    %91 = arith.extui %90 : vector<8x128xi1> to vector<8x128xi32>
    %92 = arith.sitofp %91 : vector<8x128xi32> to vector<8x128xf32>
    %93 = arith.truncf %92 : vector<8x128xf32> to vector<8x128xbf16>
    %c640 = arith.constant 640 : index
    %c0_16 = arith.constant 0 : index
    %94 = vector.load %arg3[%c640, %c0_16] : memref<896x32xbf16, #tpu.memory_space<vmem>>, vector<128x32xbf16>
    %cst_17 = arith.constant dense<0.000000e+00> : vector<8x32xf32>
    %95 = tpu.matmul %93, %94, %cst_17 {dimension_numbers = #tpu.dot_dimension_numbers<[1], [0], [0], [1], [0, 0, 1, 1], [], []>} : vector<8x128xbf16>, vector<128x32xbf16>, vector<8x32xf32> -> vector<8x32xf32>
    %96 = arith.addf %83, %95 : vector<8x32xf32>
    %c768_i32 = arith.constant 768 : i32
    %97 = vector.broadcast %c768_i32 : i32 to vector<8x128xi32>
    %98 = arith.addi %18, %97 : vector<8x128xi32>
    %99 = vector.broadcast %16 : vector<8x1xi32> to vector<8x128xi32>
    %100 = arith.cmpi eq, %98, %99 : vector<8x128xi32>
    %101 = vector.broadcast %17 : vector<8x1xi32> to vector<8x128xi32>
    %102 = arith.cmpi eq, %98, %101 : vector<8x128xi32>
    %103 = arith.ori %100, %102 : vector<8x128xi1>
    %104 = arith.extui %103 : vector<8x128xi1> to vector<8x128xi32>
    %105 = arith.sitofp %104 : vector<8x128xi32> to vector<8x128xf32>
    %106 = arith.truncf %105 : vector<8x128xf32> to vector<8x128xbf16>
    %c768 = arith.constant 768 : index
    %c0_18 = arith.constant 0 : index
    %107 = vector.load %arg3[%c768, %c0_18] : memref<896x32xbf16, #tpu.memory_space<vmem>>, vector<128x32xbf16>
    %cst_19 = arith.constant dense<0.000000e+00> : vector<8x32xf32>
    %108 = tpu.matmul %106, %107, %cst_19 {dimension_numbers = #tpu.dot_dimension_numbers<[1], [0], [0], [1], [0, 0, 1, 1], [], []>} : vector<8x128xbf16>, vector<128x32xbf16>, vector<8x32xf32> -> vector<8x32xf32>
    %109 = arith.addf %96, %108 : vector<8x32xf32>
    %c0_20 = arith.constant 0 : index
    %c0_21 = arith.constant 0 : index
    %110 = vector.load %arg5[%c0_20, %c0_21] : memref<8x32xf32, #tpu.memory_space<vmem>>, vector<8x32xf32>
    tpu.vector_store %arg5[%c0_20, %c0_21], %109 {strides = array<i32>} : memref<8x32xf32, #tpu.memory_space<vmem>>, vector<8x32xf32>,
    return
  }
  func.func @transform_0(%arg0: i32) -> (i32, i32) {
    %c0_i32 = arith.constant 0 : i32
    %c0_i32_0 = arith.constant 0 : i32
    return %arg0, %c0_i32 : i32, i32
  }
  func.func @transform_1(%arg0: i32) -> (i32, i32) {
    %c0_i32 = arith.constant 0 : i32
    %c0_i32_0 = arith.constant 0 : i32
    return %arg0, %c0_i32 : i32, i32
  }
  func.func @transform_2(%arg0: i32) -> (i32, i32) {
    %c0_i32 = arith.constant 0 : i32
    %c0_i32_0 = arith.constant 0 : i32
    %c0_i32_1 = arith.constant 0 : i32
    return %c0_i32, %c0_i32_0 : i32, i32
  }
  func.func @transform_3(%arg0: i32) -> (i32, i32) {
    %c0_i32 = arith.constant 0 : i32
    %c0_i32_0 = arith.constant 0 : i32
    %c0_i32_1 = arith.constant 0 : i32
    return %c0_i32, %c0_i32_0 : i32, i32
  }
  func.func @transform_4(%arg0: i32) -> (i32, i32) {
    %c0_i32 = arith.constant 0 : i32
    %c0_i32_0 = arith.constant 0 : i32
    return %arg0, %c0_i32 : i32, i32
  }
}

</mosaic_0001>

<bundles_post_ra>
// kernel: llm_shape_encoder_forward.1
= control target key start
LH: loop header
LB: loop body
LE: loop exit
PB: predicated region body
PF: predicated region fallthrough
CT: control target
= control target key end

     0   :  { %v1392_v2 = vmov 0   ;;  %v1393_v3 = vmov 2   ;;  %v1394_v5 = vmov 0.0   ;;  %v1395_v8 = vmov 1   ;;  %s1774_s0 = inlined_call_operand.vmem [shape: s32[8,4], index: 0, kind: input, shape index: {}]   ;;  %s1775_s1 = inlined_call_operand.vmem [shape: f32[8,32], index: 1, kind: input, shape index: {}]   ;;  %s1776_s2 = inlined_call_operand.vmem [shape: bf16[896,32], index: 2, kind: input, shape index: {}]   ;;  %s1777_s3 = inlined_call_operand.vmem [shape: bf16[128,32], index: 3, kind: input, shape index: {}]   ;;  %s1778_s4 = inlined_call_operand.hbm [shape: f32[8,32], index: 4, kind: output, shape index: {}]  }
   0x1   :  { %v19_v0 = vld [vmem:[%s1774_s0] sm:$0xff]  ;;  %1301 = vset.pattern.permute.xlu1 %v1392_v2  ;;  %1299 = vset.pattern.permute.xlu0 %v1393_v3  ;;  %v1306_v6 = vld [vmem:[%s1777_s3 + $0x8] sm:$0xff]   ;;  %v1396_v9 = vmov 3   ;;  %v1308_v10 = vld [vmem:[%s1777_s3 + $0x10] sm:$0xff]   ;;  %vm1397_vm0 = vmmov 0  }
   0x2   :  { %v1304_v1 = vld [vmem:[%s1777_s3] sm:$0xff]   ;;  %141 = vperm.xlu1 %1301, %v19_v0   ;;  %24 = vperm.xlu0 %1299, %v19_v0   ;;  %v1307_v7 = vld [vmem:[%s1776_s2 + $0xc8] sm:$0xff]   ;;  %v1309_v11 = vld [vmem:[%s1776_s2 + $0xd0] sm:$0xff]  }
   0x3   :  { %v1305_v4 = vld [vmem:[%s1776_s2 + $0xc0] sm:$0xff]   ;;  %1105 = vmatprep.subr.bf16.mxu1 %v1394_v5  ;;  %1185 = vmatprep.subr.bf16.mxu0 %v1394_v5  ;;  %v1310_v12 = vld [vmem:[%s1777_s3 + $0x18] sm:$0xff]   ;;  %v1314_v16 = vld [vmem:[%s1777_s3 + $0x28] sm:$0xff]  }
   0x4   :  { %1106 = vmatpush3.bf16.msra.mxu1 %v1304_v1  ;;  %1186 = vmatpush3.bf16.msra.mxu0 %v1305_v4  ;;  %v1311_v13 = vld [vmem:[%s1776_s2 + $0xd8] sm:$0xff]   ;;  %v1312_v14 = vld [vmem:[%s1777_s3 + $0x20] sm:$0xff]   ;;  %v1315_v17 = vld [vmem:[%s1776_s2 + $0xe8] sm:$0xff]  }
   0x5   :  { %1107 = vmatprep.subr.bf16.mxu1 %v1394_v5  ;;  %1187 = vmatprep.subr.bf16.mxu0 %v1394_v5  ;;  %v1313_v15 = vld [vmem:[%s1776_s2 + $0xe0] sm:$0xff]   ;;  %v1316_v18 = vld [vmem:[%s1777_s3 + $0x30] sm:$0xff]   ;;  %v1318_v20 = vld [vmem:[%s1777_s3 + $0x38] sm:$0xff]  }
   0x6   :  { %1302 = vset.pattern.permute.xlu1 %v1395_v8  ;;  %1300 = vset.pattern.permute.xlu0 %v1396_v9  ;;  %v1317_v19 = vld [vmem:[%s1776_s2 + $0xf0] sm:$0xff]   ;;  %v1319_v21 = vld [vmem:[%s1776_s2 + $0xf8] sm:$0xff]  }
   0x7   :  { %145 = vperm.xlu1 %1302, %v19_v0   ;;  %28 = vperm.xlu0 %1300, %v19_v0  }
   0x8   :  { %1108 = vmatpush3.bf16.msra.mxu1 %v1306_v6  ;;  %1188 = vmatpush3.bf16.msra.mxu0 %v1307_v7 }
   0x9   :  { %1109 = vmatprep.subr.bf16.mxu1 %v1394_v5  ;;  %1189 = vmatprep.subr.bf16.mxu0 %v1394_v5 }
   0xa   :  { %1121 = vmatprep.mubr.msk.bf16.mxu1 %vm1397_vm0, %v1394_v5  ;;  %1201 = vmatprep.mubr.msk.bf16.mxu0 %vm1397_vm0, %v1394_v5 }
   0xb   :  { %1303 = vset.pattern.permute.xlu0 %v1395_v8 }
   0xc   :  { %1110 = vmatpush3.bf16.msra.mxu1 %v1308_v10  ;;  %1190 = vmatpush3.bf16.msra.mxu0 %v1309_v11 }
   0xd   :  { %1111 = vmatprep.subr.bf16.mxu1 %v1394_v5  ;;  %1191 = vmatprep.subr.bf16.mxu0 %v1394_v5 }
  0x10   :  { %1112 = vmatpush3.bf16.msra.mxu1 %v1310_v12  ;;  %1192 = vmatpush3.bf16.msra.mxu0 %v1311_v13 }
  0x11   :  { %1113 = vmatprep.subr.bf16.mxu1 %v1394_v5  ;;  %1193 = vmatprep.subr.bf16.mxu0 %v1394_v5 }
  0x14   :  { %1114 = vmatpush3.bf16.msra.mxu1 %v1312_v14  ;;  %1194 = vmatpush3.bf16.msra.mxu0 %v1313_v15 }
  0x15   :  { %1115 = vmatprep.subr.bf16.mxu1 %v1394_v5  ;;  %1195 = vmatprep.subr.bf16.mxu0 %v1394_v5 }
  0x18   :  { %1116 = vmatpush3.bf16.msra.mxu1 %v1314_v16  ;;  %1196 = vmatpush3.bf16.msra.mxu0 %v1315_v17 }
  0x19   :  { %1117 = vmatprep.subr.bf16.mxu1 %v1394_v5  ;;  %1197 = vmatprep.subr.bf16.mxu0 %v1394_v5 }
  0x1c   :  { %1118 = vmatpush3.bf16.msra.mxu1 %v1316_v18  ;;  %1198 = vmatpush3.bf16.msra.mxu0 %v1317_v19 }
  0x1d   :  { %1119 = vmatprep.subr.bf16.mxu1 %v1394_v5  ;;  %1199 = vmatprep.subr.bf16.mxu0 %v1394_v5 }
  0x20   :  { %1120 = vmatpush3.bf16.msra.mxu1 %v1318_v20  ;;  %1200 = vmatpush3.bf16.msra.mxu0 %v1319_v21 }
  0x21   :  { %1125 = vmatprep.subr.bf16.mxu1 %v1394_v5  ;;  %1205 = vmatprep.subr.bf16.mxu0 %v1394_v5 }
  0x22   :  { %9 = vsyncpa [#allocation3], 0  ;;  %v21_v22 = vlaneseq  ;;  %v1320_v29 = vld [vmem:[%s1776_s2] sm:$0xff]   ;;  %v1398_v31 = vmov 1.0|1.0   ;;  %v1322_v32 = vld [vmem:[%s1776_s2 + $0x8] sm:$0xff]  }
  0x23   :  { %v1321_v30 = vld [vmem:[%s1776_s2 + $0x100] sm:$0xff]   ;;  %v1323_v33 = vld [vmem:[%s1776_s2 + $0x108] sm:$0xff]   ;;  %v1324_v35 = vld [vmem:[%s1776_s2 + $0x10] sm:$0xff]  }
  0x24   :  { %v1498_v23 = vand.u32 127, %v21_v22  ;;  %v1325_v37 = vld [vmem:[%s1776_s2 + $0x110] sm:$0xff]   ;;  %v1326_v40 = vld [vmem:[%s1776_s2 + $0x18] sm:$0xff]   ;;  %v1328_v44 = vld [vmem:[%s1776_s2 + $0x20] sm:$0xff]  }
  0x25   :  { %v1327_v42 = vld [vmem:[%s1776_s2 + $0x118] sm:$0xff]   ;;  %v1329_v45 = vld [vmem:[%s1776_s2 + $0x120] sm:$0xff]   ;;  %v1330_v46 = vld [vmem:[%s1776_s2 + $0x28] sm:$0xff]  }
  0x26   :  { %v481_v26 = vadd.s32 384, %v1498_v23  ;;  %v705_v34 = vadd.s32 640, %v1498_v23  ;;  %v369_v36 = vadd.s32 256, %v1498_v23  ;;  %v817_v38 = vadd.s32 768, %v1498_v23  ;;  %v1331_v47 = vld [vmem:[%s1776_s2 + $0x128] sm:$0xff]   ;;  %v1332_v48 = vld [vmem:[%s1776_s2 + $0x30] sm:$0xff]  }
  0x27   :  { %v1333_v49 = vld [vmem:[%s1776_s2 + $0x130] sm:$0xff]   ;;  %v1334_v50 = vld [vmem:[%s1776_s2 + $0x38] sm:$0xff]   ;;  %v593_v51 = vadd.s32 512, %v1498_v23  ;;  %v1336_v53 = vld [vmem:[%s1776_s2 + $0x40] sm:$0xff]   ;;  %v257_v3 = vadd.s32 128, %v1498_v23 }
  0x28   :  { %v1335_v52 = vld [vmem:[%s1776_s2 + $0x138] sm:$0xff]   ;;  %v1337_v54 = vld [vmem:[%s1776_s2 + $0x140] sm:$0xff]   ;;  %v1338_v55 = vld [vmem:[%s1776_s2 + $0x48] sm:$0xff]  }
  0x29   :  { %v1339_v56 = vld [vmem:[%s1776_s2 + $0x148] sm:$0xff]   ;;  %v1340_v57 = vld [vmem:[%s1776_s2 + $0x50] sm:$0xff]   ;;  %v1342_v59 = vld [vmem:[%s1776_s2 + $0x58] sm:$0xff]  }
  0x2a   :  { %v1341_v58 = vld [vmem:[%s1776_s2 + $0x150] sm:$0xff]   ;;  %v1343_v60 = vld [vmem:[%s1776_s2 + $0x158] sm:$0xff]   ;;  %v1344_v61 = vld [vmem:[%s1776_s2 + $0x60] sm:$0xff]  }
  0x2b   :  { %v1345_v62 = vld [vmem:[%s1776_s2 + $0x160] sm:$0xff]   ;;  %v1346_v63 = vld [vmem:[%s1776_s2 + $0x68] sm:$0xff]   ;;  %v1348_v1 = vld [vmem:[%s1776_s2 + $0x70] sm:$0xff]  }
  0x2c   :  { %v1347_v0 = vld [vmem:[%s1776_s2 + $0x168] sm:$0xff]   ;;  %v1349_v2 = vld [vmem:[%s1776_s2 + $0x170] sm:$0xff]   ;;  %v1350_v4 = vld [vmem:[%s1776_s2 + $0x78] sm:$0xff]  }
  0x2d   :  { %v1351_v6 = vld [vmem:[%s1776_s2 + $0x178] sm:$0xff]   ;;  %v1352_v7 = vld [vmem:[%s1776_s2 + $0x80] sm:$0xff]   ;;  %v1354_v9 = vld [vmem:[%s1776_s2 + $0x88] sm:$0xff]  }
  0x2e   :  { %v1353_v8 = vld [vmem:[%s1776_s2 + $0x180] sm:$0xff]   ;;  %v1355_v10 = vld [vmem:[%s1776_s2 + $0x188] sm:$0xff]   ;;  %v1356_v11 = vld [vmem:[%s1776_s2 + $0x90] sm:$0xff]  }
  0x2f   :  { %v1357_v12 = vld [vmem:[%s1776_s2 + $0x190] sm:$0xff]   ;;  %v1358_v13 = vld [vmem:[%s1776_s2 + $0x98] sm:$0xff]   ;;  %v1360_v15 = vld [vmem:[%s1776_s2 + $0xa0] sm:$0xff]  }
  0x30   :  { %v1359_v14 = vld [vmem:[%s1776_s2 + $0x198] sm:$0xff]   ;;  %v1361_v16 = vld [vmem:[%s1776_s2 + $0x1a0] sm:$0xff]   ;;  %v1362_v17 = vld [vmem:[%s1776_s2 + $0xa8] sm:$0xff]  }
  0x31   :  { %v1363_v18 = vld [vmem:[%s1776_s2 + $0x1a8] sm:$0xff]   ;;  %v1364_v19 = vld [vmem:[%s1776_s2 + $0xb0] sm:$0xff]   ;;  %v1366_v21 = vld [vmem:[%s1776_s2 + $0xb8] sm:$0xff]  }
  0x32   :  { %v1365_v20 = vld [vmem:[%s1776_s2 + $0x1b0] sm:$0xff]   ;;  %v1367_v22 = vld [vmem:[%s1776_s2 + $0x1b8] sm:$0xff]   ;;  %s1399_s2 = smov [#allocation2]  }
  0x33   :  { %s937_s8 = sshll.u32 %s1399_s2, 4  ;;  %s938_s8 = int_to_ptr.vmem [resolvable:$true] %s937_s8 }
  0x34   :  { %s1368_s9 = scalar_lea.vmem %s938_s8, 128  ;;  %p1373_p1 = scmp.lt.s32.totalorder %s938_s8, %s938_s8 }
  0x35   :  { %p1369_p0 = scmp.ne.s32.totalorder %s938_s8, %s1368_s9  ;;  %p1374_p2 = scmp.lt.s32.totalorder %s1368_s9, %s1368_s9 }
  0x37   :  { %p1375_p3 = por %p1374_p2, %p1373_p1 }
  0x39   :  { %p1376_p4 = pnand %p1375_p3, %p1369_p0 }
  0x81   :  { %v25_v24 = vpop.permute.xlu0 %24  ;;  %v1500_v25 = vpop.permute.xlu1 %141 }
  0x82   :  { %vm26_vm1 = vcmp.eq.s32.totalorder %v1498_v23, %v25_v24  ;;  %vm482_vm6 = vcmp.eq.s32.totalorder %v481_v26, %v1500_v25  ;;  %vm706_vm10 = vcmp.eq.s32.totalorder %v705_v34, %v1500_v25  ;;  %vm370_vm13 = vcmp.eq.s32.totalorder %v369_v36, %v1500_v25 }
  0x86   :  { %v1503_v27 = vpop.permute.xlu1 %145  ;;  %v29_v28 = vpop.permute.xlu0 %28 }
  0x87   :  { %vm30_vm2 = vcmp.eq.s32.totalorder %v1498_v23, %v29_v28  ;;  %vm483_vm3 = vcmp.eq.s32.totalorder %v481_v26, %v1503_v27  ;;  %vm707_vm9 = vcmp.eq.s32.totalorder %v705_v34, %v1503_v27  ;;  %vm371_vm11 = vcmp.eq.s32.totalorder %v369_v36, %v1503_v27 }
  0x88   :  { %vm31_vm4 = vmor %vm26_vm1, %vm30_vm2  ;;  %vm819_vm14 = vcmp.eq.s32.totalorder %v817_v38, %v1503_v27  ;;  %vm818_vm1 = vcmp.eq.s32.totalorder %v817_v38, %v1500_v25 }
  0x89   :  { %vm954_vm5 = vmpackc.low %vm31_vm4, %vm31_vm4  ;;  %vm143_vm4 = vcmp.eq.s32.totalorder %v1498_v23, %v1500_v25 }
  0x8a   :  { %1122 = vmatmul.mubr.msk.bf16.vlgmr.msra.gmra.mrb[0].mxu1 %vm954_vm5, %v1398_v31  ;;  %vm484_vm7 = vmor %vm482_vm6, %vm483_vm3  ;;  %vm147_vm3 = vcmp.eq.s32.totalorder %v1498_v23, %v1503_v27  ;;  %vm595_vm5 = vcmp.eq.s32.totalorder %v593_v51, %v1503_v27  ;;  %v20_v23 = vld [vmem:[%s1775_s1] sm:$0xff] }
  0x8b   :  { %1126 = vmatpush3.bf16.msra.mxu1 %v1320_v29  ;;  %vm998_vm8 = vmpackc.low %vm484_vm7, %vm484_vm7  ;;  %1141 = vmatprep.mubr.msk.bf16.mxu1 %vm1397_vm0, %v1394_v5  ;;  %vm594_vm7 = vcmp.eq.s32.totalorder %v593_v51, %v1500_v25 }
  0x8c   :  { %1202 = vmatmul.mubr.msk.bf16.vlgmr.msra.gmra.mrb[0].mxu0 %vm998_vm8, %v1398_v31  ;;  %1127 = vmatprep.subr.bf16.mxu1 %v1394_v5  ;;  %vm1543_vm12 = vmor %vm706_vm10, %vm707_vm9 }
  0x8d   :  { %1206 = vmatpush3.bf16.msra.mxu0 %v1321_v30  ;;  %1221 = vmatprep.mubr.msk.bf16.mxu0 %vm1397_vm0, %v1394_v5  ;;  %vm1553_vm15 = vmor %vm370_vm13, %vm371_vm11  ;;  %vm259_vm11 = vcmp.eq.s32.totalorder %v257_v3, %v1503_v27  ;;  %vm258_vm13 = vcmp.eq.s32.totalorder %v257_v3, %v1500_v25 }
  0x8e   :  { %1207 = vmatprep.subr.bf16.mxu0 %v1394_v5  ;;  %vm1562_vm2 = vmor %vm818_vm1, %vm819_vm14 }
  0x8f   :  { %1128 = vmatpush3.bf16.msra.mxu1 %v1322_v32  ;;  %vm148_vm6 = vmor %vm143_vm4, %vm147_vm3 }
  0x90   :  { %1129 = vmatprep.subr.bf16.mxu1 %v1394_v5  ;;  %vm596_vm8 = vmor %vm594_vm7, %vm595_vm5 }
  0x91   :  { %1208 = vmatpush3.bf16.msra.mxu0 %v1323_v33  ;;  %vm965_vm9 = vmpackc.low %vm148_vm6, %vm148_vm6 }
  0x92   :  { %1209 = vmatprep.subr.bf16.mxu0 %v1394_v5  ;;  %vm1009_vm10 = vmpackc.low %vm596_vm8, %vm596_vm8 }
  0x93   :  { %1130 = vmatpush3.bf16.msra.mxu1 %v1324_v35  ;;  %vm260_vm14 = vmor %vm258_vm13, %vm259_vm11 }
  0x94   :  { %1131 = vmatprep.subr.bf16.mxu1 %v1394_v5  ;;  %vm976_vm1 = vmpackc.low %vm260_vm14, %vm260_vm14 }
  0x95   :  { %1210 = vmatpush3.bf16.msra.mxu0 %v1325_v37  ;;  %vm1020_vm3 = vmpackc.low %vm1543_vm12, %vm1543_vm12 }
  0x96   :  { %1211 = vmatprep.subr.bf16.mxu0 %v1394_v5  ;;  %vm1031_vm12 = vmpackc.low %vm1562_vm2, %vm1562_vm2 }
  0x97   :  { %1132 = vmatpush3.bf16.msra.mxu1 %v1326_v40 }
  0x98   :  { %1133 = vmatprep.subr.bf16.mxu1 %v1394_v5 }
  0x99   :  { %1212 = vmatpush3.bf16.msra.mxu0 %v1327_v42 }
  0x9a   :  { %1213 = vmatprep.subr.bf16.mxu0 %v1394_v5 }
  0x9b   :  { %1134 = vmatpush3.bf16.msra.mxu1 %v1328_v44 }
  0x9c   :  { %1135 = vmatprep.subr.bf16.mxu1 %v1394_v5 }
  0x9d   :  { %1214 = vmatpush3.bf16.msra.mxu0 %v1329_v45 }
  0x9e   :  { %1215 = vmatprep.subr.bf16.mxu0 %v1394_v5 }
  0x9f   :  { %1136 = vmatpush3.bf16.msra.mxu1 %v1330_v46 }
  0xa0   :  { %1137 = vmatprep.subr.bf16.mxu1 %v1394_v5 }
  0xa1   :  { %1216 = vmatpush3.bf16.msra.mxu0 %v1331_v47 }
  0xa2   :  { %1217 = vmatprep.subr.bf16.mxu0 %v1394_v5 }
  0xa3   :  { %1138 = vmatpush3.bf16.msra.mxu1 %v1332_v48 }
  0xa4   :  { %1139 = vmatprep.subr.bf16.mxu1 %v1394_v5 }
  0xa5   :  { %1218 = vmatpush3.bf16.msra.mxu0 %v1333_v49 }
  0xa6   :  { %1219 = vmatprep.subr.bf16.mxu0 %v1394_v5 }
  0xa7   :  { %1140 = vmatpush3.bf16.msra.mxu1 %v1334_v50 }
  0xa8   :  { %1145 = vmatprep.subr.bf16.mxu1 %v1394_v5 }
  0xa9   :  { %1220 = vmatpush3.bf16.msra.mxu0 %v1335_v52 }
  0xaa   :  { %1142 = vmatmul.mubr.msk.bf16.vlgmr.msra.gmra.mrb[0].mxu1 %vm965_vm9, %v1398_v31  ;;  %1225 = vmatprep.subr.bf16.mxu0 %v1394_v5 }
  0xab   :  { %1146 = vmatpush3.bf16.msra.mxu1 %v1336_v53  ;;  %1161 = vmatprep.mubr.msk.bf16.mxu1 %vm1397_vm0, %v1394_v5 }
  0xac   :  { %1222 = vmatmul.mubr.msk.bf16.vlgmr.msra.gmra.mrb[0].mxu0 %vm1009_vm10, %v1398_v31  ;;  %1147 = vmatprep.subr.bf16.mxu1 %v1394_v5 }
  0xad   :  { %1226 = vmatpush3.bf16.msra.mxu0 %v1337_v54  ;;  %1241 = vmatprep.mubr.msk.bf16.mxu0 %vm1397_vm0, %v1394_v5 }
  0xae   :  { %1227 = vmatprep.subr.bf16.mxu0 %v1394_v5 }
  0xaf   :  { %1148 = vmatpush3.bf16.msra.mxu1 %v1338_v55 }
  0xb0   :  { %1149 = vmatprep.subr.bf16.mxu1 %v1394_v5 }
  0xb1   :  { %1228 = vmatpush3.bf16.msra.mxu0 %v1339_v56 }
  0xb2   :  { %1229 = vmatprep.subr.bf16.mxu0 %v1394_v5 }
  0xb3   :  { %1150 = vmatpush3.bf16.msra.mxu1 %v1340_v57 }
  0xb4   :  { %1151 = vmatprep.subr.bf16.mxu1 %v1394_v5 }
  0xb5   :  { %1230 = vmatpush3.bf16.msra.mxu0 %v1341_v58 }
  0xb6   :  { %1231 = vmatprep.subr.bf16.mxu0 %v1394_v5 }
  0xb7   :  { %1152 = vmatpush3.bf16.msra.mxu1 %v1342_v59 }
  0xb8   :  { %1153 = vmatprep.subr.bf16.mxu1 %v1394_v5 }
  0xb9   :  { %1232 = vmatpush3.bf16.msra.mxu0 %v1343_v60 }
  0xba   :  { %1233 = vmatprep.subr.bf16.mxu0 %v1394_v5 }
  0xbb   :  { %1154 = vmatpush3.bf16.msra.mxu1 %v1344_v61 }
  0xbc   :  { %1155 = vmatprep.subr.bf16.mxu1 %v1394_v5 }
  0xbd   :  { %1234 = vmatpush3.bf16.msra.mxu0 %v1345_v62 }
  0xbe   :  { %1235 = vmatprep.subr.bf16.mxu0 %v1394_v5 }
  0xbf   :  { %1156 = vmatpush3.bf16.msra.mxu1 %v1346_v63 }
  0xc0   :  { %1157 = vmatprep.subr.bf16.mxu1 %v1394_v5 }
  0xc1   :  { %1236 = vmatpush3.bf16.msra.mxu0 %v1347_v0 }
  0xc2   :  { %1237 = vmatprep.subr.bf16.mxu0 %v1394_v5 }
  0xc3   :  { %1158 = vmatpush3.bf16.msra.mxu1 %v1348_v1 }
  0xc4   :  { %1159 = vmatprep.subr.bf16.mxu1 %v1394_v5 }
  0xc5   :  { %1238 = vmatpush3.bf16.msra.mxu0 %v1349_v2 }
  0xc6   :  { %1239 = vmatprep.subr.bf16.mxu0 %v1394_v5 }
  0xc7   :  { %1160 = vmatpush3.bf16.msra.mxu1 %v1350_v4 }
  0xc8   :  { %1165 = vmatprep.subr.bf16.mxu1 %v1394_v5 }
  0xc9   :  { %1240 = vmatpush3.bf16.msra.mxu0 %v1351_v6 }
  0xca   :  { %1162 = vmatmul.mubr.msk.bf16.vlgmr.msra.gmra.mrb[0].mxu1 %vm976_vm1, %v1398_v31  ;;  %1245 = vmatprep.subr.bf16.mxu0 %v1394_v5 }
  0xcb   :  { %1166 = vmatpush3.bf16.msra.mxu1 %v1352_v7  ;;  %1181 = vmatprep.mubr.msk.bf16.mxu1 %vm1397_vm0, %v1394_v5 }
  0xcc   :  { %1242 = vmatmul.mubr.msk.bf16.vlgmr.msra.gmra.mrb[0].mxu0 %vm1020_vm3, %v1398_v31  ;;  %1167 = vmatprep.subr.bf16.mxu1 %v1394_v5 }
  0xcd   :  { %1246 = vmatpush3.bf16.msra.mxu0 %v1353_v8  ;;  %1261 = vmatprep.mubr.msk.bf16.mxu0 %vm1397_vm0, %v1394_v5  ;;  %vm987_vm0 = vmpackc.low %vm1553_vm15, %vm1553_vm15  ;;  %vm929_vm15 = vcmask 261120  }
  0xce   :  { %1247 = vmatprep.subr.bf16.mxu0 %v1394_v5 }
  0xcf   :  { %1168 = vmatpush3.bf16.msra.mxu1 %v1354_v9 }
  0xd0   :  { %1169 = vmatprep.subr.bf16.mxu1 %v1394_v5 }
  0xd1   :  { %1248 = vmatpush3.bf16.msra.mxu0 %v1355_v10 }
  0xd2   :  { %1249 = vmatprep.subr.bf16.mxu0 %v1394_v5 }
  0xd3   :  { %1170 = vmatpush3.bf16.msra.mxu1 %v1356_v11 }
  0xd4   :  { %1171 = vmatprep.subr.bf16.mxu1 %v1394_v5 }
  0xd5   :  { %1250 = vmatpush3.bf16.msra.mxu0 %v1357_v12 }
  0xd6   :  { %1251 = vmatprep.subr.bf16.mxu0 %v1394_v5 }
  0xd7   :  { %1172 = vmatpush3.bf16.msra.mxu1 %v1358_v13 }
  0xd8   :  { %1173 = vmatprep.subr.bf16.mxu1 %v1394_v5 }
  0xd9   :  { %1252 = vmatpush3.bf16.msra.mxu0 %v1359_v14 }
  0xda   :  { %1253 = vmatprep.subr.bf16.mxu0 %v1394_v5 }
  0xdb   :  { %1174 = vmatpush3.bf16.msra.mxu1 %v1360_v15 }
  0xdc   :  { %1175 = vmatprep.subr.bf16.mxu1 %v1394_v5 }
  0xdd   :  { %1254 = vmatpush3.bf16.msra.mxu0 %v1361_v16 }
  0xde   :  { %1255 = vmatprep.subr.bf16.mxu0 %v1394_v5 }
  0xdf   :  { %1176 = vmatpush3.bf16.msra.mxu1 %v1362_v17 }
  0xe0   :  { %1177 = vmatprep.subr.bf16.mxu1 %v1394_v5 }
  0xe1   :  { %1256 = vmatpush3.bf16.msra.mxu0 %v1363_v18 }
  0xe2   :  { %1257 = vmatprep.subr.bf16.mxu0 %v1394_v5 }
  0xe3   :  { %1178 = vmatpush3.bf16.msra.mxu1 %v1364_v19 }
  0xe4   :  { %1179 = vmatprep.subr.bf16.mxu1 %v1394_v5 }
  0xe5   :  { %1258 = vmatpush3.bf16.msra.mxu0 %v1365_v20 }
  0xe6   :  { %1259 = vmatprep.subr.bf16.mxu0 %v1394_v5 }
  0xe7   :  { %1180 = vmatpush3.bf16.msra.mxu1 %v1366_v21 }
  0xe9   :  { %1260 = vmatpush3.bf16.msra.mxu0 %v1367_v22 }
  0xea   :  { %1182 = vmatmul.mubr.msk.bf16.vlgmr.msra.gmra.mrb[0].mxu1 %vm987_vm0, %v1398_v31 }
  0xec   :  { %1262 = vmatmul.mubr.msk.bf16.vlgmr.msra.gmra.mrb[0].mxu0 %vm1031_vm12, %v1398_v31 }
 0x1bd   :  { %v474_v24 = vpop.f32.mrb[0].mxu1 }
 0x1be   :  { %v1265_v5 = vadd.f32 %v474_v24, %v20_v23  ;;  %v1183_v25 = vpop.f32.mrb[1].mxu1 }
 0x1bf   :  { %v922_v26 = vpop.f32.mrb[0].mxu0  ;;  %v477_v27 = vpop.f32.mrb[2].mxu1 }
 0x1c0   :  { %v1266_v28 = vadd.f32 %v1265_v5, %v922_v26  ;;  %v1263_v29 = vpop.f32.mrb[1].mxu0  ;;  %v1184_v30 = vpop.f32.mrb[3].mxu1 }
 0x1c1   :  { %v925_v32 = vpop.f32.mrb[2].mxu0 }
 0x1c2   :  { %v1264_v33 = vpop.f32.mrb[3].mxu0  ;;  %930 = vst.msk [vmem:[#allocation2] sm:$0xff] %vm929_vm15, %v1266_v28 }
 0x1c3   :  { %1379 = shalt.err (!%p1376_p4)
}
 0x1c4   :  { %s1380_s11 = scalar_lea.hbm %s1778_s4, 128 }
 0x1c5   :  { %p1381_p5 = scmp.ne.s32.totalorder %s1778_s4, %s1380_s11  ;;  %p1384_p6 = scmp.lt.u32.totalorder %s1380_s11, %s1778_s4 }
 0x1c7   :  { %p1386_p7 = pnand %p1384_p6, %p1381_p5 }
 0x1c9   :  { %1389 = shalt.err (!%p1386_p7)
}
 0x1ca   :  { %940 = dma.vmem_to_hbm [thread:$0]  %s938_s8, 128, %s1778_s4, [#allocation3]  }
 0x1cb   :  { %1390 = dma.done.wait [#allocation3], 128  }
 0x1cc   :  { %1391 = vsyncadd [#allocation3], 4294967168 }
 0x1cd   :  { %944 = vsyncpa [#allocation3], 1 }

</bundles_post_ra>
